<compile_context>
chip_gen: v7x
topology: tpu7x:2x2x1
jax: 0.10.0
libtpu: 0.0.40
codegen_flags: <defaults>
</compile_context>

<pallas_src>
import functools

import jax
import jax.numpy as jnp
from jax.experimental import pallas as pl
from jax.experimental.pallas import tpu as pltpu


# ---------------------------------------------------------------------------
# In-kernel helpers
# ---------------------------------------------------------------------------
def _conv_du(mc, w1, b1, w2, b2):
    """Pooled channel vector (C, 1) -> sigmoid gate (C, 1). Pure VPU/XLU/EUP."""
    h = jnp.sum(mc * w1, axis=0, keepdims=True) + b1        # (1, C//16)
    h = jnp.where(h >= 0.0, h, 0.1 * h)                     # LeakyReLU(0.1)
    y = jnp.sum(h * w2, axis=-1, keepdims=True) + b2        # (C, 1)
    return 1.0 / (1.0 + jnp.exp(-y))                        # sigmoid


# ---------------------------------------------------------------------------
# Kernel 1 (fast path): fully fused per-sample CALayer.
#   x block (1, C, H*W) resident -> f32-accumulated mean + tiny FC + scale.
#   x is read once and written once; no full-block f32 upcast is kept live.
# ---------------------------------------------------------------------------
def _ca_fused_kernel(x_ref, w1_ref, b1_ref, w2_ref, b2_ref, o_ref, *, inv_hw):
    xb = x_ref[...]                                               # (1, C, HW)
    mc = jnp.sum(xb, axis=-1, keepdims=True, dtype=jnp.float32)[0] * inv_hw
    y = _conv_du(mc, w1_ref[...], b1_ref[...], w2_ref[...], b2_ref[...])
    o_ref[...] = (xb * y.astype(xb.dtype)[None, :, :]).astype(o_ref.dtype)


# ---------------------------------------------------------------------------
# Kernel 2a (tiled path): spatial-sum reduction accumulated directly into the
# f32 output block; on the last spatial step the tiny FC + sigmoid is applied
# in place, so the output of this pass is already the gate (N, C, 1).
# Tail lanes of a partial trailing block are masked (no host-side padding).
# ---------------------------------------------------------------------------
def _ca_pool_gate_kernel(x_ref, w1_ref, b1_ref, w2_ref, b2_ref, gate_ref,
                         *, hw, ts, needs_mask):
    s = pl.program_id(1)

    @pl.when(s == 0)
    def _():
        gate_ref[...] = jnp.zeros_like(gate_ref)

    xb = x_ref[...]                                               # (1, C, ts)
    if needs_mask:
        lane = jax.lax.broadcasted_iota(jnp.int32, xb.shape, 2)
        valid = hw - s * ts                                       # lanes in-bounds
        xb = jnp.where(lane < valid, xb, jnp.zeros_like(xb))
    gate_ref[...] += jnp.sum(xb, axis=-1, keepdims=True, dtype=jnp.float32)

    @pl.when(s == pl.num_programs(1) - 1)
    def _():
        mc = gate_ref[0] * (1.0 / float(hw))                      # (C, 1) mean
        y = _conv_du(mc, w1_ref[...], b1_ref[...], w2_ref[...], b2_ref[...])
        gate_ref[...] = y[None, :, :]                             # store the gate


# ---------------------------------------------------------------------------
# Kernel 2b (tiled path): pure broadcast multiply, fully parallel grid.
# ---------------------------------------------------------------------------
def _ca_scale_kernel(gate_ref, x_ref, o_ref):
    xb = x_ref[...]                                               # (1, C, ts)
    y = gate_ref[0]                                               # (C, 1) f32
    o_ref[...] = (xb * y.astype(xb.dtype)[None, :, :]).astype(o_ref.dtype)


# ---------------------------------------------------------------------------
# Budget / tiling helpers
# ---------------------------------------------------------------------------
def _fused_budget():
    """(max per-sample slab bytes for the fused path, vmem_limit_bytes)."""
    try:
        vmem_phys = int(pltpu.get_tpu_info().vmem_capacity_bytes)
    except Exception:
        vmem_phys = 64 << 20                      # conservative (v7x-sized)
    if vmem_phys <= (64 << 20):                   # v7x: 64 MiB physical VMEM
        return 10 << 20, 48 << 20
    return 22 << 20, 96 << 20                     # v5e / v6e: 128 MiB physical


def _pick_spatial_tile(C, HW, itemsize, target_bytes=2 << 20):
    """Largest multiple-of-128 spatial tile with ~target_bytes per x block."""
    if C * HW * itemsize <= target_bytes:
        return HW
    ts = (target_bytes // (C * itemsize)) // 128 * 128
    return int(max(128, min(ts, HW)))


# ---------------------------------------------------------------------------
# Wrapper
# ---------------------------------------------------------------------------
def ca_layer_forward(x, params, *, spatial_tile=None, force_tiled=False):
    """CALayer forward.  x: (N, C, H, W) NCHW, matching the PyTorch module."""
    N, C, H, W = x.shape
    HW = H * W
    w1, b1, w2, b2 = params['w1'], params['b1'], params['w2'], params['b2']
    C16 = w1.shape[1]
    itemsize = jnp.dtype(x.dtype).itemsize
    x3 = x.reshape(N, C, HW)                                # spatial on lanes

    slab_limit, vmem_limit = _fused_budget()
    slab_bytes = C * HW * itemsize
    weight_bytes = (2 * C * C16 + C16 + C) * 4

    if not force_tiled and slab_bytes <= slab_limit:
        # ---- single fused pass: x read once, written once ----
        # TODO(synk): for N == 1 on v7x, one of the two TensorCores idles here;
        # a channel-split parallel axis would recover it at some extra traffic.
        out = pl.pallas_call(
            functools.partial(_ca_fused_kernel, inv_hw=1.0 / float(HW)),
            out_shape=jax.ShapeDtypeStruct((N, C, HW), x.dtype),
            grid=(N,),
            in_specs=[
                pl.BlockSpec((1, C, HW), lambda n: (n, 0, 0)),
                pl.BlockSpec((C, C16), lambda n: (0, 0)),
                pl.BlockSpec((1, C16), lambda n: (0, 0)),
                pl.BlockSpec((C, C16), lambda n: (0, 0)),
                pl.BlockSpec((C, 1), lambda n: (0, 0)),
            ],
            out_specs=pl.BlockSpec((1, C, HW), lambda n: (n, 0, 0)),
            compiler_params=pltpu.CompilerParams(
                dimension_semantics=("parallel",),
                vmem_limit_bytes=vmem_limit),
            cost_estimate=pl.CostEstimate(
                flops=3 * N * C * HW + 4 * N * C * C16,
                transcendentals=N * C,
                bytes_accessed=2 * N * C * HW * itemsize + weight_bytes),
        )(x3, w1, b1, w2, b2)
        return out.reshape(N, C, H, W)

    # ---- two-pass tiled path: bounded VMEM, no host-side pad/slice ----
    if spatial_tile is None:
        ts = _pick_spatial_tile(C, HW, itemsize)
    else:
        ts = int(min(spatial_tile, HW))
        assert ts == HW or ts % 128 == 0, \
            "spatial_tile must be a multiple of 128 (or cover all of H*W)"
    n_s = pl.cdiv(HW, ts)
    needs_mask = (HW % ts) != 0

    gate = pl.pallas_call(
        functools.partial(_ca_pool_gate_kernel, hw=HW, ts=ts,
                          needs_mask=needs_mask),
        out_shape=jax.ShapeDtypeStruct((N, C, 1), jnp.float32),
        grid=(N, n_s),
        in_specs=[
            pl.BlockSpec((1, C, ts), lambda n, s: (n, 0, s)),
            pl.BlockSpec((C, C16), lambda n, s: (0, 0)),
            pl.BlockSpec((1, C16), lambda n, s: (0, 0)),
            pl.BlockSpec((C, C16), lambda n, s: (0, 0)),
            pl.BlockSpec((C, 1), lambda n, s: (0, 0)),
        ],
        out_specs=pl.BlockSpec((1, C, 1), lambda n, s: (n, 0, 0)),
        compiler_params=pltpu.CompilerParams(
            dimension_semantics=("parallel", "arbitrary")),
        cost_estimate=pl.CostEstimate(
            flops=2 * N * C * HW + 4 * N * C * C16,
            transcendentals=N * C,
            bytes_accessed=N * C * HW * itemsize + N * C * 4 + weight_bytes),
    )(x3, w1, b1, w2, b2)

    out = pl.pallas_call(
        _ca_scale_kernel,
        out_shape=jax.ShapeDtypeStruct((N, C, HW), x.dtype),
        grid=(N, n_s),
        in_specs=[
            pl.BlockSpec((1, C, 1), lambda n, s: (n, 0, 0)),
            pl.BlockSpec((1, C, ts), lambda n, s: (n, 0, s)),
        ],
        out_specs=pl.BlockSpec((1, C, ts), lambda n, s: (n, 0, s)),
        compiler_params=pltpu.CompilerParams(
            dimension_semantics=("parallel", "parallel")),
        cost_estimate=pl.CostEstimate(
            flops=N * C * HW,
            transcendentals=0,
            bytes_accessed=2 * N * C * HW * itemsize + N * C * 4),
    )(gate, x3)

    return out.reshape(N, C, H, W)


# ---------------------------------------------------------------------------
# Deterministic parameter init + pure-JAX reference (for validation)
# ---------------------------------------------------------------------------
def init_ca_params(key, channel):
    c16 = channel // 16
    k1, k2, k3, k4 = jax.random.split(key, 4)
    return {
        'w1': 0.1 * jax.random.normal(k1, (channel, c16), jnp.float32),  # conv1.weight^T
        'b1': 0.05 * jax.random.normal(k2, (1, c16), jnp.float32),
        'w2': 0.1 * jax.random.normal(k3, (channel, c16), jnp.float32),  # conv2.weight
        'b2': 0.05 * jax.random.normal(k4, (channel, 1), jnp.float32),
    }


def ca_layer_ref(x, params):
    y = jnp.mean(x, axis=(2, 3))                            # (N, C)
    h = y @ params['w1'] + params['b1']                     # (N, C//16)
    h = jnp.where(h >= 0.0, h, 0.1 * h)                     # LeakyReLU(0.1)
    s = h @ params['w2'].T + params['b2'][:, 0][None, :]    # (N, C)
    s = jax.nn.sigmoid(s)
    return x * s[:, :, None, None]


# ---------------------------------------------------------------------------
# Main
# ---------------------------------------------------------------------------
if __name__ == "__main__":
    key = jax.random.PRNGKey(0)
    kx, kp, kx2 = jax.random.split(key, 3)
    N, C, H, W = 2, 64, 16, 16
    x = jax.random.normal(kx, (N, C, H, W), jnp.float32)
    params = init_ca_params(kp, C)

    # Fused single-pass path (the one used at these shapes).
    out_fused = jax.block_until_ready(ca_layer_forward(x, params))
    # Tiled two-pass path, even split (2 spatial tiles of 128, no masking).
    out_tiled = jax.block_until_ready(
        ca_layer_forward(x, params, spatial_tile=128, force_tiled=True))

    # Tiled path with a partial trailing block (H*W = 160 -> tiles 128 + 32),
    # exercising the in-kernel tail-lane masking (no host-side pad/slice).
    x2 = jax.random.normal(kx2, (N, C, 16, 10), jnp.float32)
    out_ragged = jax.block_until_ready(
        ca_layer_forward(x2, params, spatial_tile=128, force_tiled=True))

    ref = ca_layer_ref(x, params)
    ref2 = ca_layer_ref(x2, params)

    assert out_fused.shape == (N, C, H, W)
    assert out_tiled.shape == (N, C, H, W)
    assert out_ragged.shape == x2.shape
    assert bool(jnp.isfinite(out_fused).all())
    assert bool(jnp.allclose(out_fused, ref, rtol=1e-5, atol=1e-5))
    assert bool(jnp.allclose(out_tiled, ref, rtol=1e-5, atol=1e-5))
    assert bool(jnp.allclose(out_ragged, ref2, rtol=1e-5, atol=1e-5))
    print("KERNEL_OK")
</pallas_src>

<mosaic_0001>
module attributes {stable_mosaic.version = 11 : i64} {
  func.func @_ca_fused_kernel(%arg0: i32, %arg1: memref<1x64x256xf32, #tpu.memory_space<vmem>>, %arg2: memref<64x4xf32, #tpu.memory_space<vmem>>, %arg3: memref<1x4xf32, #tpu.memory_space<vmem>>, %arg4: memref<64x4xf32, #tpu.memory_space<vmem>>, %arg5: memref<64x1xf32, #tpu.memory_space<vmem>>, %arg6: memref<1x64x256xf32, #tpu.memory_space<vmem>>) attributes {dimension_semantics = [#tpu.dimension_semantics<parallel>], iteration_bounds = array<i64: 2>, scalar_prefetch = 0 : i64, scratch_operands = 0 : i64, tpu.core_type = #tpu.core_type<tc>, window_params = [{transform_indices = @transform_0, window_bounds = array<i64: 1, 64, 256>}, {pipeline_mode = #tpu.pipeline_mode<synchronous>, transform_indices = @transform_1, window_bounds = array<i64: 64, 4>}, {pipeline_mode = #tpu.pipeline_mode<synchronous>, transform_indices = @transform_2, window_bounds = array<i64: 1, 4>}, {pipeline_mode = #tpu.pipeline_mode<synchronous>, transform_indices = @transform_3, window_bounds = array<i64: 64, 4>}, {pipeline_mode = #tpu.pipeline_mode<synchronous>, transform_indices = @transform_4, window_bounds = array<i64: 64, 1>}, {transform_indices = @transform_5, window_bounds = array<i64: 1, 64, 256>}]} {
    %c0 = arith.constant 0 : index
    %c0_0 = arith.constant 0 : index
    %c0_1 = arith.constant 0 : index
    %0 = vector.load %arg1[%c0, %c0_0, %c0_1] : memref<1x64x256xf32, #tpu.memory_space<vmem>>, vector<1x64x256xf32>
    %cst = arith.constant dense<0.000000e+00> : vector<1x64xf32>
    %1 = vector.multi_reduction <add>, %0, %cst [2] : vector<1x64x256xf32> to vector<1x64xf32>
    %2 = vector.shape_cast %1 : vector<1x64xf32> to vector<1x64x1xf32>
    %3 = vector.shape_cast %2 : vector<1x64x1xf32> to vector<64x1xf32>
    %cst_2 = arith.constant 3.906250e-03 : f32
    %4 = vector.broadcast %cst_2 : f32 to vector<64x1xf32>
    %5 = arith.mulf %3, %4 : vector<64x1xf32>
    %c0_3 = arith.constant 0 : index
    %c0_4 = arith.constant 0 : index
    %6 = vector.load %arg2[%c0_3, %c0_4] : memref<64x4xf32, #tpu.memory_space<vmem>>, vector<64x4xf32>
    %c0_5 = arith.constant 0 : index
    %c0_6 = arith.constant 0 : index
    %7 = vector.load %arg3[%c0_5, %c0_6] : memref<1x4xf32, #tpu.memory_space<vmem>>, vector<1x4xf32>
    %c0_7 = arith.constant 0 : index
    %c0_8 = arith.constant 0 : index
    %8 = vector.load %arg4[%c0_7, %c0_8] : memref<64x4xf32, #tpu.memory_space<vmem>>, vector<64x4xf32>
    %c0_9 = arith.constant 0 : index
    %c0_10 = arith.constant 0 : index
    %9 = vector.load %arg5[%c0_9, %c0_10] : memref<64x1xf32, #tpu.memory_space<vmem>>, vector<64x1xf32>
    %10 = vector.broadcast %5 : vector<64x1xf32> to vector<64x4xf32>
    %11 = arith.mulf %10, %6 : vector<64x4xf32>
    %cst_11 = arith.constant dense<0.000000e+00> : vector<4xf32>
    %12 = vector.multi_reduction <add>, %11, %cst_11 [0] : vector<64x4xf32> to vector<4xf32>
    %13 = vector.shape_cast %12 : vector<4xf32> to vector<1x4xf32>
    %14 = arith.addf %13, %7 : vector<1x4xf32>
    %cst_12 = arith.constant 0.000000e+00 : f32
    %15 = vector.broadcast %cst_12 : f32 to vector<1x4xf32>
    %16 = arith.cmpf oge, %14, %15 : vector<1x4xf32>
    %cst_13 = arith.constant 1.000000e-01 : f32
    %17 = vector.broadcast %cst_13 : f32 to vector<1x4xf32>
    %18 = arith.mulf %17, %14 : vector<1x4xf32>
    %19 = arith.select %16, %14, %18 : vector<1x4xi1>, vector<1x4xf32>
    %20 = vector.broadcast %19 : vector<1x4xf32> to vector<64x4xf32>
    %21 = arith.mulf %20, %8 : vector<64x4xf32>
    %cst_14 = arith.constant dense<0.000000e+00> : vector<64xf32>
    %22 = vector.multi_reduction <add>, %21, %cst_14 [1] : vector<64x4xf32> to vector<64xf32>
    %23 = vector.shape_cast %22 : vector<64xf32> to vector<64x1xf32>
    %24 = arith.addf %23, %9 : vector<64x1xf32>
    %cst_15 = arith.constant 0.000000e+00 : f32
    %25 = vector.broadcast %cst_15 : f32 to vector<64x1xf32>
    %26 = arith.subf %25, %24 : vector<64x1xf32>
    %27 = math.exp %26 : vector<64x1xf32>
    %cst_16 = arith.constant 1.000000e+00 : f32
    %28 = vector.broadcast %cst_16 : f32 to vector<64x1xf32>
    %29 = arith.addf %28, %27 : vector<64x1xf32>
    %cst_17 = arith.constant 1.000000e+00 : f32
    %30 = vector.broadcast %cst_17 : f32 to vector<64x1xf32>
    %31 = arith.divf %30, %29 : vector<64x1xf32>
    %32 = vector.shape_cast %31 : vector<64x1xf32> to vector<1x64x1xf32>
    %33 = vector.broadcast %32 : vector<1x64x1xf32> to vector<1x64x256xf32>
    %34 = arith.mulf %0, %33 : vector<1x64x256xf32>
    %c0_18 = arith.constant 0 : index
    %c0_19 = arith.constant 0 : index
    %c0_20 = arith.constant 0 : index
    %35 = vector.load %arg6[%c0_18, %c0_19, %c0_20] : memref<1x64x256xf32, #tpu.memory_space<vmem>>, vector<1x64x256xf32>
    tpu.vector_store %arg6[%c0_18, %c0_19, %c0_20], %34 {strides = array<i32>} : memref<1x64x256xf32, #tpu.memory_space<vmem>>, vector<1x64x256xf32>,
    return
  }
  func.func @transform_0(%arg0: i32) -> (i32, i32, i32) {
    %c0_i32 = arith.constant 0 : i32
    %c0_i32_0 = arith.constant 0 : i32
    %c0_i32_1 = arith.constant 0 : i32
    return %arg0, %c0_i32, %c0_i32_0 : i32, i32, i32
  }
  func.func @transform_1(%arg0: i32) -> (i32, i32) {
    %c0_i32 = arith.constant 0 : i32
    %c0_i32_0 = arith.constant 0 : i32
    %c0_i32_1 = arith.constant 0 : i32
    return %c0_i32, %c0_i32_0 : i32, i32
  }
  func.func @transform_2(%arg0: i32) -> (i32, i32) {
    %c0_i32 = arith.constant 0 : i32
    %c0_i32_0 = arith.constant 0 : i32
    %c0_i32_1 = arith.constant 0 : i32
    return %c0_i32, %c0_i32_0 : i32, i32
  }
  func.func @transform_3(%arg0: i32) -> (i32, i32) {
    %c0_i32 = arith.constant 0 : i32
    %c0_i32_0 = arith.constant 0 : i32
    %c0_i32_1 = arith.constant 0 : i32
    return %c0_i32, %c0_i32_0 : i32, i32
  }
  func.func @transform_4(%arg0: i32) -> (i32, i32) {
    %c0_i32 = arith.constant 0 : i32
    %c0_i32_0 = arith.constant 0 : i32
    %c0_i32_1 = arith.constant 0 : i32
    return %c0_i32, %c0_i32_0 : i32, i32
  }
  func.func @transform_5(%arg0: i32) -> (i32, i32, i32) {
    %c0_i32 = arith.constant 0 : i32
    %c0_i32_0 = arith.constant 0 : i32
    %c0_i32_1 = arith.constant 0 : i32
    return %arg0, %c0_i32, %c0_i32_0 : i32, i32, i32
  }
}

</mosaic_0001>

<bundles_post_ra>
// kernel: tpu_custom_call.1
= control target key start
LH: loop header
LB: loop body
LE: loop exit
PB: predicated region body
PF: predicated region fallthrough
CT: control target
= control target key end

     0   :  { %10 = vsyncpa [#allocation3], 0  ;;  %s1177_s0 = inlined_call_operand.hbm [shape: f32[2,64,256], index: 0, kind: input, shape index: {}]   ;;  %s1178_s1 = inlined_call_operand.vmem [shape: f32[64,4], index: 1, kind: input, shape index: {}]   ;;  %s1179_s2 = inlined_call_operand.vmem [shape: f32[1,4], index: 2, kind: input, shape index: {}]   ;;  %s1180_s3 = inlined_call_operand.vmem [shape: f32[64,4], index: 3, kind: input, shape index: {}]   ;;  %s1181_s4 = inlined_call_operand.vmem [shape: f32[64,1], index: 4, kind: input, shape index: {}]   ;;  %s1182_s5 = inlined_call_operand.hbm [shape: f32[2,64,256], index: 5, kind: output, shape index: {}]  }
   0x1   :  { %12 = vsyncpa [#allocation3 + $0x1], 0 }
   0x2   :  { %13 = vsyncpa [#allocation4], 0 }
   0x3   :  { %15 = vsyncpa [#allocation4 + $0x1], 0  ;;  %s837_s18 = smov 0   ;;  %s839_s19 = smov 0  }
   0x4   :  { %s841_s20 = smov 0   ;;  %s843_s21 = smov 0  }
   0x5 LB: > { %s858_s22 = sadd.s32 4294967295, %s798_s21   ;;  %s601_s23 = sadd.s32 4294967294, %s798_s21   ;;  %s798_s21 = sphi %s843_s21, %s1195_s21   ;;  %s794_s20 = sphi %s841_s20, %s1194_s20   ;;  %s790_s19 = sphi %s839_s19, %s1193_s19   ;;  %s786_s18 = sphi %s837_s18, %s1192_s18  }
   0x6   : > { %s862_s24 = sadd.s32 1, %s798_s21   ;;  %s28_s25 = sadd.s32 1, %s794_s20 }
   0x7   : > { %s25_s26 = ssub.s32 %s798_s21, %s862_s24  ;;  %p35_p0 = scmp.ne.s32.totalorder %s794_s20, %s790_s19 }
   0x8   : > { %p26_p1 = scmp.eq.s32.totalorder %s25_s26, 0  ;;  %p36_p2 = scmp.eq.s32.totalorder %s798_s21, 0 }
   0x9   : > { %p41_p3 = scmp.ne.s32.totalorder %s790_s19, %s786_s18  ;;  %p42_p4 = scmp.eq.s32.totalorder %s858_s22, 0 }
   0xa   : > { %s874_s27 = scalar_select %p26_p1, %s794_s20, %s28_s25  }
   0xb   : > { %p876_p5 = por %p36_p2, %p35_p0  ;;  %p880_p6 = por %p42_p4, %p41_p3 }
   0xc   : > { %p149_p7 = scmp.eq.s32.totalorder %s858_s22, 1  ;;  %p155_p8 = scmp.eq.s32.totalorder %s601_s23, 1 }
   0xd   : > { %p629_p10 = scmp.lt.s32.totalorder %s798_s21, 2  ;;  %s187_s7 = sand.u32 1, %s794_s20  }
   0xe   : > { %p887_p11 = por %p149_p7, %p35_p0  ;;  %p891_p12 = por %p155_p8, %p41_p3 }
   0xf   : > { %s615_s8 = sshll.u32 %s798_s21, 11  ;;  %s604_s9 = sshll.u32 %s187_s7, 7 }
  0x10   : > { %s1186_s30 = scalar_select %p887_p11, 1, 0 }
  0x11   : > { %s1187_s6 = scalar_select %p891_p12, 1, 0 }
  0x12   : > { %s900_s12 = scalar_lea.hbm %s1177_s0, %s615_s8  ;;  %s191_s13 = scalar_lea.vmem [#allocation2], %s604_s9 }
  0x13   : > { %s198_s14 = sshll.u32 %s191_s13, 4  ;;  %p904_p13 = pnand %p629_p10, %p876_p5  ;;  %s908_s14 = int_to_ptr.vmem [resolvable:$true] %s198_s14 }
  0x14   : > { %s910_s16 = scalar_lea.sflag [#allocation3], %s187_s7  ;;  %s702_s17 = scalar_lea.hbm %s900_s12, 2048 }
  0x15   : > { %p703_p0 = scmp.ne.s32.totalorder %s900_s12, %s702_s17  ;;  %p704_p1 = pneg %p904_p13 }
  0x16   : > { %s707_s26 = scalar_lea.hbm %s1177_s0, 4096  ;;  %p708_p4 = scmp.lt.u32.totalorder %s900_s12, %s1177_s0 }
  0x17   : > { %p705_p2 = pnand %p704_p1, %p703_p0  ;;  %p709_p5 = scmp.lt.u32.totalorder %s707_s26, %s702_s17 }
  0x18   : > { %p711_p8 = scmp.lt.u32.totalorder %s702_s17, %s900_s12 }
  0x19   : > { %p706_p3 = pneg %p705_p2  ;;  %p710_p7 = por %p709_p5, %p708_p4 }
  0x1b   : > { %p712_p10 = por %p711_p8, %p710_p7 }
  0x1d   : > { %p713_p9 = pnand %p712_p10, %p706_p3 }
  0x1f   : > { %716 = shalt.err (!%p713_p9)
}
  0x20   : > { %s717_s7 = scalar_lea.vmem %s908_s14, 2048  ;;  %s800_s9 = smov [#allocation2]  }
  0x21   : > { %p718_p0 = scmp.ne.s32.totalorder %s908_s14, %s717_s7  ;;  %s722_s10 = sshll.u32 %s800_s9, 4  ;;  %s723_s10 = int_to_ptr.vmem [resolvable:$false] %s722_s10 }
  0x22   : > { %s724_s11 = scalar_lea.vmem %s723_s10, 4096  ;;  %p725_p11 = scmp.lt.s32.totalorder %s908_s14, %s723_s10 }
  0x23   : > { %p720_p2 = pnand %p718_p0, %p704_p1  ;;  %p726_p4 = scmp.lt.s32.totalorder %s724_s11, %s717_s7 }
  0x25   : > { %p721_p12 = pneg %p720_p2  ;;  %p727_p5 = por %p726_p4, %p725_p11 }
  0x27   : > { %p728_p7 = pnand %p727_p5, %p721_p12 }
  0x29   : > { %731 = shalt.err (!%p728_p7)
}
  0x2a   : > { %s801_s13 = smov 256   ;;  %s802_s17 = smov 16  }
  0x2b   : > { %624 = dma.hbm_to_vmem [thread:$0]  (!%p904_p13), %s900_s12, 2048, %s908_s14, %s910_s16, %s801_s13, %s801_s13, %s802_s17  }
  0x2c   : > { %p607_p9 = scmp.ge.s32.totalorder %s798_s21, 1  ;;  %p206_p1 = scmp.lt.s32.totalorder %s798_s21, 3 }
  0x2e   : > { %p207_p3 = pnand %p607_p9, %p206_p1 }
  0x2f   : > { %s941_s23 = sand.u32 (!%p207_p3), 1, %s790_s19  }
  0x30   : > { %210 = sbr.rel (%p207_p3) target bundleno = 588 (0x24c), region = 40  ;;  %s608_s25 = sshll.u32 (!%p207_p3), %s941_s23, 7 }
  0x31   : > { %s213_s26 = scalar_lea.sflag (!%p207_p3), [#allocation3], %s941_s23  ;;  %s216_s28 = scalar_lea.vmem (!%p207_p3), [#allocation2], %s608_s25 }
  0x37   : > { %777 = dma.done.wait (%p880_p6), %s213_s26, 2048  }
  0x38   : > { %779 = vsyncadd (%p880_p6), %s213_s26, 4294965248  ;;  %v951_v0 = vld [vmem:[%s216_s28] sm:$0xff]  ;;  %v953_v1 = vld [vmem:[%s216_s28 + $0x8] sm:$0xff]  ;;  %vm324_vm0 = vcmask 31744   ;;  %s1096_s10 = scalar_lea.vmem [#allocation5], %s608_s25  ;;  %s616_s25 = sshll.u32 %s858_s22, 11 }
  0x39   : > { %v955_v2 = vld [vmem:[%s216_s28 + $0x20] sm:$0xff]  ;;  %v259_v3 = vadd.f32 %v953_v1, %v951_v0  ;;  %v959_v4 = vld [vmem:[%s216_s28 + $0x28] sm:$0xff]  ;;  %v961_v5 = vld [vmem:[%s216_s28 + $0x10] sm:$0xff]  ;;  %s528_s11 = sshll.u32 %s1096_s10, 4  ;;  %s1127_s26 = scalar_lea.hbm %s1182_s5, %s616_s25  ;;  %s1129_s11 = int_to_ptr.vmem [resolvable:$true] %s528_s11 }
  0x3a   : > { %v963_v6 = vld [vmem:[%s216_s28 + $0x18] sm:$0xff]  ;;  %v265_v7 = vadd.f32 %v959_v4, %v955_v2  ;;  %v967_v8 = vld [vmem:[%s216_s28 + $0x30] sm:$0xff]  ;;  %v975_v12 = vld [vmem:[%s216_s28 + $0x40] sm:$0xff]  ;;  %s515_s22 = scalar_lea.sflag [#allocation4], %s941_s23  ;;  %p1189_p11 = scmp.ne.s32.totalorder %s1186_s30, 0 }
  0x3b   : > { %v969_v9 = vld [vmem:[%s216_s28 + $0x38] sm:$0xff]  ;;  %260 = vadd.xlane.f32.xlu0 %v259_v3  ;;  %v262_v10 = vadd.f32 %v963_v6, %v961_v5  ;;  %v977_v13 = vld [vmem:[%s216_s28 + $0x48] sm:$0xff]  ;;  %v979_v14 = vld [vmem:[%s216_s28 + $0x50] sm:$0xff]  ;;  %s804_s29 = smov [#allocation5]  }
  0x3c   : > { %266 = vadd.xlane.f32.xlu1 %v265_v7  ;;  %v268_v11 = vadd.f32 %v969_v9, %v967_v8  ;;  %v981_v15 = vld [vmem:[%s216_s28 + $0x58] sm:$0xff]  ;;  %v271_v16 = vadd.f32 %v977_v13, %v975_v12  ;;  %v987_v18 = vld [vmem:[%s216_s28 + $0x60] sm:$0xff]  ;;  %v989_v19 = vld [vmem:[%s216_s28 + $0x68] sm:$0xff]  ;;  %s736_s12 = sshll.u32 %s804_s29, 4  ;;  %s737_s12 = int_to_ptr.vmem [resolvable:$false] %s736_s12 }
  0x3d   : > { %v274_v17 = vadd.f32 %v981_v15, %v979_v14  ;;  %v991_v20 = vld [vmem:[%s216_s28 + $0x70] sm:$0xff]  ;;  %v993_v21 = vld [vmem:[%s216_s28 + $0x78] sm:$0xff]  ;;  %v277_v22 = vadd.f32 %v989_v19, %v987_v18  ;;  %v291_v27 = vld [vmem:[%s1178_s1] sm:$0xff]  ;;  %s732_s28 = scalar_lea.vmem %s1129_s11, 2048  ;;  %s738_s14 = scalar_lea.vmem %s737_s12, 4096 }
  0x3e   : > { %v280_v23 = vadd.f32 %v993_v21, %v991_v20  ;;  %v293_v29 = vld [vmem:[%s1178_s1 + $0x10] sm:$0xff]  ;;  %v292_v30 = vld [vmem:[%s1178_s1 + $0x8] sm:$0xff]  ;;  %v294_v34 = vld [vmem:[%s1178_s1 + $0x18] sm:$0xff]  ;;  %p733_p6 = scmp.ne.s32.totalorder %s1129_s11, %s732_s28  ;;  %p739_p8 = scmp.lt.s32.totalorder %s1129_s11, %s737_s12 }
  0x3f   : > { %263 = vadd.xlane.f32.xlu0 %v262_v10  ;;  %v295_v40 = vld [vmem:[%s1178_s1 + $0x20] sm:$0xff]  ;;  %v296_v45 = vld [vmem:[%s1178_s1 + $0x28] sm:$0xff]  ;;  %v297_v54 = vld [vmem:[%s1178_s1 + $0x30] sm:$0xff]  ;;  %p740_p10 = scmp.lt.s32.totalorder %s738_s14, %s732_s28 }
  0x40   : > { %269 = vadd.xlane.f32.xlu1 %v268_v11  ;;  %v298_v58 = vld [vmem:[%s1178_s1 + $0x38] sm:$0xff]  ;;  %p734_p12 = pnand %p733_p6, %p1189_p11 }
  0x41   : > { %p741_p0 = por %p740_p10, %p739_p8 }
  0x42   : > { %p735_p13 = pneg %p734_p12 }
  0x43   : > { %272 = vadd.xlane.f32.xlu0 %v271_v16 }
  0x44   : > { %275 = vadd.xlane.f32.xlu1 %v274_v17  ;;  %p742_p2 = pnand %p741_p0, %p735_p13 }
  0x47   : > { %278 = vadd.xlane.f32.xlu0 %v277_v22 }
  0x48   : > { %281 = vadd.xlane.f32.xlu1 %v280_v23 }
  0xc8   : > { %v261_v24 = vpop.xlane.xlu0 %260 }
  0xc9   : > { %v283_v25 = vmul.f32 0.00390625, %v261_v24  ;;  %v267_v26 = vpop.xlane.xlu1 %266 }
  0xca   : > { %v285_v28 = vmul.f32 0.00390625, %v267_v26  ;;  %v350_v26 = vlaneseq }
  0xcb   : > { %v316_v32 = vmul.f32 %v291_v27, %v283_v25 }
  0xcc   : > { %v264_v31 = vpop.xlane.xlu0 %263  ;;  %v318_v37 = vmul.f32 %v293_v29, %v285_v28  ;;  %v299_v29 = vld [vmem:[%s1179_s2] sm:$0x1] }
  0xcd   : > { %v284_v33 = vmul.f32 0.00390625, %v264_v31  ;;  %v270_v35 = vpop.xlane.xlu1 %269  ;;  %v325_v42 = vsel %vm324_vm0, %v316_v32, 0.0 }
  0xce   : > { %v286_v36 = vmul.f32 0.00390625, %v270_v35  ;;  %v328_v49 = vsel %vm324_vm0, %v318_v37, 0.0  ;;  %v300_v37 = vld [vmem:[%s1180_s3] sm:$0xff] }
  0xcf   : > { %v317_v38 = vmul.f32 %v292_v30, %v284_v33  ;;  %v351_v30 = vshrl.u32 %v350_v26, 7 }
  0xd0   : > { %v319_v39 = vmul.f32 %v294_v34, %v286_v36  ;;  %v273_v41 = vpop.xlane.xlu0 %272  ;;  %v301_v36 = vld [vmem:[%s1180_s3 + $0x8] sm:$0xff] }
  0xd1   : > { %v326_v43 = vsel %vm324_vm0, %v317_v38, 0.0  ;;  %v287_v44 = vmul.f32 0.00390625, %v273_v41  ;;  %v276_v46 = vpop.xlane.xlu1 %275  ;;  %v352_v33 = vsub.s32 0, %v351_v30  ;;  %v313_v30 = vld [vmem:[%s1181_s4 + $0x28] sm:$0xff] }
  0xd2   : > { %v327_v47 = vadd.f32 %v326_v43, %v325_v42  ;;  %v288_v48 = vmul.f32 0.00390625, %v276_v46  ;;  %v330_v50 = vsel %vm324_vm0, %v319_v39, 0.0  ;;  %v303_v39 = vld [vmem:[%s1180_s3 + $0x18] sm:$0xff] }
  0xd3   : > { %v320_v51 = vmul.f32 %v295_v40, %v287_v44  ;;  %v302_v40 = vld [vmem:[%s1180_s3 + $0x10] sm:$0xff] }
  0xd4   : > { %v329_v52 = vadd.f32 %v328_v49, %v327_v47  ;;  %v321_v53 = vmul.f32 %v296_v45, %v288_v48  ;;  %v279_v55 = vpop.xlane.xlu0 %278  ;;  %v305_v47 = vld [vmem:[%s1180_s3 + $0x28] sm:$0xff]  ;;  %v304_v48 = vld [vmem:[%s1180_s3 + $0x20] sm:$0xff] }
  0xd5   : > { %v332_v56 = vsel %vm324_vm0, %v320_v51, 0.0  ;;  %v289_v57 = vmul.f32 0.00390625, %v279_v55  ;;  %v282_v59 = vpop.xlane.xlu1 %281 }
  0xd6   : > { %v331_v60 = vadd.f32 %v330_v50, %v329_v52  ;;  %v290_v61 = vmul.f32 0.00390625, %v282_v59  ;;  %v334_v62 = vsel %vm324_vm0, %v321_v53, 0.0  ;;  %v307_v53 = vld [vmem:[%s1180_s3 + $0x38] sm:$0xff] }
  0xd7   : > { %v322_v63 = vmul.f32 %v297_v54, %v289_v57  ;;  %v306_v54 = vld [vmem:[%s1180_s3 + $0x30] sm:$0xff] }
  0xd8   : > { %v333_v3 = vadd.f32 %v332_v56, %v331_v60  ;;  %v323_v7 = vmul.f32 %v298_v58, %v290_v61  ;;  %v803_v61 = vmov 0  }
  0xd9   : > { %v336_v10 = vsel %vm324_vm0, %v322_v63, 0.0  ;;  %669 = vset.pattern.permute.xlu1 %v803_v61  ;;  %668 = vset.pattern.permute.xlu0 %v803_v61  ;;  %v308_v63 = vld [vmem:[%s1181_s4] sm:$0xff] }
  0xda   : > { %v335_v11 = vadd.f32 %v334_v62, %v333_v3  ;;  %v338_v16 = vsel %vm324_vm0, %v323_v7, 0.0  ;;  %v309_v62 = vld [vmem:[%s1181_s4 + $0x8] sm:$0xff] }
  0xdc   : > { %v337_v17 = vadd.f32 %v336_v10, %v335_v11 }
  0xde   : > { %v339_v22 = vadd.f32 %v338_v16, %v337_v17  ;;  %v311_v16 = vld [vmem:[%s1181_s4 + $0x18] sm:$0xff]  ;;  %v310_v17 = vld [vmem:[%s1181_s4 + $0x10] sm:$0xff] }
  0xe0   : > { %v340_v23 = vrot.slane %v339_v22, 4 }
  0xe2   : > { %v341_v24 = vadd.f32 %v340_v23, %v339_v22 }
  0xe4   : > { %v342_v25 = vrot.slane %v341_v24, 2 }
  0xe6   : > { %v343_v27 = vadd.f32 %v342_v25, %v341_v24 }
  0xe8   : > { %v344_v28 = vrot.slane %v343_v27, 1 }
  0xea   : > { %v345_v31 = vadd.f32 %v344_v28, %v343_v27 }
  0xec   : > { %v346_v32 = vadd.f32 %v345_v31, %v299_v29  ;;  %v312_v31 = vld [vmem:[%s1181_s4 + $0x20] sm:$0xff] }
  0xee   : > { %vm347_vm1 = vcmp.ge.f32.partialorder %v346_v32, 0.0  ;;  %v348_v34 = vmul.f32 0.1, %v346_v32 }
  0xf0   : > { %v349_v35 = vsel %vm347_vm1, %v346_v32, %v348_v34 }
  0xf1   : > { %v353_v38 = vrot.slane %v349_v35, %v352_v33 }
  0xf3   : > { %v355_v41 = vmul.f32 %v353_v38, %v301_v36  ;;  %v354_v42 = vmul.f32 %v353_v38, %v300_v37  ;;  %v357_v45 = vmul.f32 %v353_v38, %v303_v39  ;;  %v356_v46 = vmul.f32 %v353_v38, %v302_v40  ;;  %v314_v40 = vld [vmem:[%s1181_s4 + $0x30] sm:$0xff] }
  0xf4   : > { %v359_v51 = vmul.f32 %v353_v38, %v305_v47  ;;  %v358_v52 = vmul.f32 %v353_v38, %v304_v48  ;;  %v361_v57 = vmul.f32 %v353_v38, %v307_v53  ;;  %v360_v58 = vmul.f32 %v353_v38, %v306_v54 }
  0xf5   : > { %v365_v43 = vsel %vm324_vm0, %v355_v41, 0.0  ;;  %v362_v44 = vsel %vm324_vm0, %v354_v42, 0.0  ;;  %v371_v49 = vsel %vm324_vm0, %v357_v45, 0.0  ;;  %v368_v50 = vsel %vm324_vm0, %v356_v46, 0.0  ;;  %v315_v45 = vld [vmem:[%s1181_s4 + $0x38] sm:$0xff] }
  0xf6   : > { %366 = vadd.xlane.f32.xlu1 %v365_v43  ;;  %363 = vadd.xlane.f32.xlu0 %v362_v44  ;;  %v377_v55 = vsel %vm324_vm0, %v359_v51, 0.0  ;;  %v374_v56 = vsel %vm324_vm0, %v358_v52, 0.0  ;;  %v383_v59 = vsel %vm324_vm0, %v361_v57, 0.0  ;;  %v380_v60 = vsel %vm324_vm0, %v360_v58, 0.0 }
  0xfa   : > { %372 = vadd.xlane.f32.xlu1 %v371_v49  ;;  %369 = vadd.xlane.f32.xlu0 %v368_v50 }
  0xfe   : > { %378 = vadd.xlane.f32.xlu1 %v377_v55  ;;  %375 = vadd.xlane.f32.xlu0 %v374_v56 }
 0x102   : > { %384 = vadd.xlane.f32.xlu1 %v383_v59  ;;  %381 = vadd.xlane.f32.xlu0 %v380_v60 }
 0x183   : > { %v367_v3 = vpop.xlane.xlu1 %366  ;;  %v364_v7 = vpop.xlane.xlu0 %363 }
 0x184   : > { %v387_v10 = vadd.f32 %v367_v3, %v309_v62  ;;  %v386_v11 = vadd.f32 %v364_v7, %v308_v63 }
 0x186   : > { %v395_v22 = vsub.f32 0.0, %v387_v10  ;;  %v394_v23 = vsub.f32 0.0, %v386_v11 }
 0x187   : > { %v373_v24 = vpop.xlane.xlu1 %372  ;;  %v370_v25 = vpop.xlane.xlu0 %369 }
 0x188   : > { %v404_v26 = vmul.f32 1.442695, %v395_v22  ;;  %v402_v27 = vmul.f32 1.442695, %v394_v23  ;;  %v389_v28 = vadd.f32 %v373_v24, %v311_v16  ;;  %v388_v29 = vadd.f32 %v370_v25, %v310_v17 }
 0x18a   : > { %670 = vpow2.f32 %v404_v26  ;;  %v397_v32 = vsub.f32 0.0, %v389_v28  ;;  %v396_v33 = vsub.f32 0.0, %v388_v29 }
 0x18b   : > { %672 = vpow2.f32 %v402_v27  ;;  %v379_v34 = vpop.xlane.xlu1 %378  ;;  %v376_v35 = vpop.xlane.xlu0 %375 }
 0x18c   : > { %v408_v36 = vmul.f32 1.442695, %v397_v32  ;;  %v406_v37 = vmul.f32 1.442695, %v396_v33  ;;  %v391_v38 = vadd.f32 %v379_v34, %v313_v30  ;;  %v390_v39 = vadd.f32 %v376_v35, %v312_v31 }
 0x18e   : > { %674 = vpow2.f32 %v408_v36  ;;  %v399_v41 = vsub.f32 0.0, %v391_v38  ;;  %v398_v42 = vsub.f32 0.0, %v390_v39 }
 0x18f   : > { %676 = vpow2.f32 %v406_v37  ;;  %v382_v43 = vpop.xlane.xlu0 %381  ;;  %v385_v46 = vpop.xlane.xlu1 %384 }
 0x190   : > { %v410_v44 = vmul.f32 1.442695, %v398_v42  ;;  %v392_v47 = vadd.f32 %v382_v43, %v314_v40  ;;  %v412_v48 = vmul.f32 1.442695, %v399_v41  ;;  %v393_v49 = vadd.f32 %v385_v46, %v315_v45 }
 0x192   : > { %678 = vpow2.f32 %v410_v44  ;;  %v400_v50 = vsub.f32 0.0, %v392_v47  ;;  %v401_v55 = vsub.f32 0.0, %v393_v49 }
 0x193   : > { %680 = vpow2.f32 %v412_v48 }
 0x194   : > { %v671_v51 = vpop.eup %670  ;;  %v414_v56 = vmul.f32 1.442695, %v400_v50  ;;  %v416_v60 = vmul.f32 1.442695, %v401_v55 }
 0x195   : > { %v673_v52 = vpop.eup %672  ;;  %v419_v53 = vadd.f32 1.0, %v671_v51 }
 0x196   : > { %v418_v54 = vadd.f32 1.0, %v673_v52 }
 0x197   : > { %682 = vrcp.f32 %v419_v53 }
 0x198   : > { %v675_v57 = vpop.eup %674  ;;  %684 = vrcp.f32 %v418_v54 }
 0x199   : > { %v677_v58 = vpop.eup %676  ;;  %686 = vpow2.f32 %v414_v56  ;;  %v421_v61 = vadd.f32 1.0, %v675_v57 }
 0x19a   : > { %v420_v59 = vadd.f32 1.0, %v677_v58 }
 0x19c   : > { %688 = vrcp.f32 %v420_v59  ;;  %v679_v62 = vpop.eup %678 }
 0x19d   : > { %690 = vpow2.f32 %v416_v60  ;;  %v681_v63 = vpop.eup %680  ;;  %v422_v3 = vadd.f32 1.0, %v679_v62 }
 0x19e   : > { %692 = vrcp.f32 %v421_v61  ;;  %v423_v11 = vadd.f32 1.0, %v681_v63 }
 0x19f   : > { %694 = vrcp.f32 %v422_v3 }
 0x1a0   : > { %696 = vrcp.f32 %v423_v11 }
 0x1a1   : > { %v683_v7 = vpop.eup %682 }
 0x1a2   : > { %v685_v10 = vpop.eup %684  ;;  %449 = vperm.xlu1 %669, %v683_v7  }
 0x1a3   : > { %444 = vperm.xlu0 %668, %v685_v10   ;;  %v687_v16 = vpop.eup %686 }
 0x1a4   : > { %v424_v22 = vadd.f32 1.0, %v687_v16 }
 0x1a6   : > { %v689_v17 = vpop.eup %688  ;;  %698 = vrcp.f32 %v424_v22 }
 0x1a7   : > { %454 = vperm.xlu1 %669, %v689_v17   ;;  %v691_v23 = vpop.eup %690 }
 0x1a8   : > { %v693_v24 = vpop.eup %692  ;;  %v425_v25 = vadd.f32 1.0, %v691_v23 }
 0x1a9   : > { %v695_v26 = vpop.eup %694 }
 0x1aa   : > { %700 = vrcp.f32 %v425_v25  ;;  %v697_v27 = vpop.eup %696 }
 0x1ab   : > { %459 = vperm.xlu1 %669, %v693_v24  }
 0x1af   : > { %464 = vperm.xlu1 %669, %v695_v26  }
 0x1b0   : > { %v699_v28 = vpop.eup %698 }
 0x1b3   : > { %469 = vperm.xlu1 %669, %v697_v27  }
 0x1b4   : > { %v701_v29 = vpop.eup %700 }
 0x1b7   : > { %474 = vperm.xlu1 %669, %v699_v28  }
 0x1bb   : > { %479 = vperm.xlu1 %669, %v701_v29  }
 0x221   : > { %v450_v30 = vpop.permute.xlu1 %449 }
 0x222   : > { %v484_v31 = vmul.f32 %v450_v30, %v961_v5  ;;  %v485_v32 = vmul.f32 %v450_v30, %v963_v6  ;;  %v445_v33 = vpop.permute.xlu0 %444 }
 0x223   : > { %v482_v34 = vmul.f32 %v445_v33, %v951_v0  ;;  %v483_v35 = vmul.f32 %v445_v33, %v953_v1 }
 0x224   : > { %500 = vst [vmem:[%s1096_s10 + $0x10] sm:$0xff] %v484_v31  ;;  %501 = vst [vmem:[%s1096_s10 + $0x18] sm:$0xff] %v485_v32 }
 0x225   : > { %498 = vst [vmem:[%s1096_s10] sm:$0xff] %v482_v34  ;;  %499 = vst [vmem:[%s1096_s10 + $0x8] sm:$0xff] %v483_v35 }
 0x226   : > { %v455_v0 = vpop.permute.xlu1 %454 }
 0x227   : > { %v486_v1 = vmul.f32 %v455_v0, %v955_v2  ;;  %v487_v5 = vmul.f32 %v455_v0, %v959_v4 }
 0x229   : > { %502 = vst [vmem:[%s1096_s10 + $0x20] sm:$0xff] %v486_v1  ;;  %503 = vst [vmem:[%s1096_s10 + $0x28] sm:$0xff] %v487_v5 }
 0x22a   : > { %v460_v6 = vpop.permute.xlu1 %459 }
 0x22b   : > { %v488_v36 = vmul.f32 %v460_v6, %v967_v8  ;;  %v489_v37 = vmul.f32 %v460_v6, %v969_v9 }
 0x22d   : > { %504 = vst [vmem:[%s1096_s10 + $0x30] sm:$0xff] %v488_v36  ;;  %505 = vst [vmem:[%s1096_s10 + $0x38] sm:$0xff] %v489_v37 }
 0x22e   : > { %v465_v38 = vpop.permute.xlu1 %464 }
 0x22f   : > { %v490_v2 = vmul.f32 %v465_v38, %v975_v12  ;;  %v491_v4 = vmul.f32 %v465_v38, %v977_v13 }
 0x231   : > { %506 = vst [vmem:[%s1096_s10 + $0x40] sm:$0xff] %v490_v2  ;;  %507 = vst [vmem:[%s1096_s10 + $0x48] sm:$0xff] %v491_v4 }
 0x232   : > { %v470_v39 = vpop.permute.xlu1 %469 }
 0x233   : > { %v492_v40 = vmul.f32 %v470_v39, %v979_v14  ;;  %v493_v8 = vmul.f32 %v470_v39, %v981_v15 }
 0x235   : > { %508 = vst [vmem:[%s1096_s10 + $0x50] sm:$0xff] %v492_v40  ;;  %509 = vst [vmem:[%s1096_s10 + $0x58] sm:$0xff] %v493_v8 }
 0x236   : > { %v475_v9 = vpop.permute.xlu1 %474 }
 0x237   : > { %v494_v41 = vmul.f32 %v475_v9, %v987_v18  ;;  %v495_v12 = vmul.f32 %v475_v9, %v989_v19 }
 0x239   : > { %510 = vst [vmem:[%s1096_s10 + $0x60] sm:$0xff] %v494_v41  ;;  %511 = vst [vmem:[%s1096_s10 + $0x68] sm:$0xff] %v495_v12 }
 0x23a   : > { %v480_v13 = vpop.permute.xlu1 %479 }
 0x23b   : > { %v496_v14 = vmul.f32 %v480_v13, %v991_v20  ;;  %v497_v15 = vmul.f32 %v480_v13, %v993_v21 }
 0x23d   : > { %512 = vst [vmem:[%s1096_s10 + $0x70] sm:$0xff] %v496_v14  ;;  %513 = vst [vmem:[%s1096_s10 + $0x78] sm:$0xff] %v497_v15 }
 0x23e   : > { %745 = shalt.err (!%p742_p2)
}
 0x23f   : > { %s746_s15 = scalar_lea.hbm %s1127_s26, 2048  ;;  %s750_s7 = scalar_lea.hbm %s1182_s5, 4096 }
 0x240   : > { %p747_p4 = scmp.ne.s32.totalorder %s1127_s26, %s746_s15  ;;  %p751_p9 = scmp.lt.u32.totalorder %s1127_s26, %s1182_s5 }
 0x241   : > { %p752_p1 = scmp.lt.u32.totalorder %s750_s7, %s746_s15  ;;  %p754_p6 = scmp.lt.u32.totalorder %s746_s15, %s1127_s26 }
 0x242   : > { %p748_p5 = pnand %p747_p4, %p1189_p11 }
 0x243   : > { %p753_p3 = por %p752_p1, %p751_p9 }
 0x244   : > { %p749_p7 = pneg %p748_p5 }
 0x245   : > { %p755_p12 = por %p754_p6, %p753_p3 }
 0x247   : > { %p756_p13 = pnand %p755_p12, %p749_p7 }
 0x249   : > { %759 = shalt.err (!%p756_p13)
}
 0x24a   : > { %s805_s25 = smov 256   ;;  %s806_s13 = smov 16  }
 0x24b   : > { %619 = dma.vmem_to_hbm [thread:$0]  (%p1189_p11), %s1129_s11, 2048, %s1127_s26, %s515_s22, %s805_s25, %s805_s25, %s806_s13  }
 0x24c PF: > { %s543_s17 = sand.u32 1, %s786_s18   ;;  %p1190_p8 = scmp.ne.s32.totalorder %s1187_s6, 0 }
 0x24d   : > { %p1191_p10 = scmp.ge.s32.totalorder %s798_s21, 2  ;;  %s544_s28 = scalar_lea.sflag [#allocation4], %s543_s17 }
 0x24f   : > { %p626_p0 = pnand %p1191_p10, %p1190_p8 }
 0x251   : > { %781 = dma.done.wait (!%p626_p0), %s544_s28, 2048  }
 0x252   : > { %783 = vsyncadd (!%p626_p0), %s544_s28, 4294965248  ;;  %p18_p2 = scmp.ge.s32.totalorder %s862_s24, 4   ;;  %s1192_s18 = smov %s790_s19 }
 0x253   : > { %s1193_s19 = smov %s794_s20  ;;  %s1194_s20 = smov %s874_s27 }
 0x254   : > { %s1195_s21 = smov %s862_s24  ;;  %20 = sbr.rel (!%p18_p2) target bundleno = 5 (0x5), region = 85 }
 0x25b   :  { %549 = vsyncpa [#allocation3], 1 }
 0x25c   :  { %551 = vsyncpa [#allocation3 + $0x1], 1 }
 0x25d   :  { %552 = vsyncpa [#allocation4], 1 }
 0x25e   :  { %554 = vsyncpa [#allocation4 + $0x1], 1 }

</bundles_post_ra>
